<compile_context>
chip_gen: v6e
topology: v6e:2x2x1
jax: 0.10.0
libtpu: 0.0.40
codegen_flags: <defaults>
</compile_context>

<pallas_src>
import math
import functools

import jax
import jax.numpy as jnp
from jax.experimental import pallas as pl
from jax.experimental.pallas import tpu as pltpu


def _proto_loss_kernel(gt_ref, x_ref, w_ref, out_ref, acc_ref, *,
                       cos_m, sin_m, scale, use_margin, easy_margin, th, mm):
    j = pl.program_id(1)

    @pl.when(j == 0)
    def _():
        acc_ref[...] = jnp.zeros_like(acc_ref)

    x = x_ref[0]                              # (C, t) features, native dtype
    labels = gt_ref[0]                        # (1, t) int32, lane-dense

    # per-column 1/||x|| (F.normalize, eps=1e-12). Squared-sum in f32; the
    # reduction over C is a cheap sublane (axis-0) reduce. rsqrt -> EUP.
    xf = x.astype(jnp.float32)
    ss = jnp.sum(xf * xf, axis=0, keepdims=True)               # (1, t)
    inv_norm = jax.lax.rsqrt(jnp.maximum(ss, 1e-24))            # == 1/max(||x||,1e-12)

    # cosine = wn @ x on the MXU in the input dtype, then per-column rescale
    # (normalize-after-matmul: exactly equivalent, no (C,t) f32 temp).
    cosine = jnp.dot(w_ref[...], x,
                     preferred_element_type=jnp.float32) * inv_norm   # (K, t) f32

    # target-class cosine: boolean mask select + sublane sum -> (1, t)
    cls_iota = jax.lax.broadcasted_iota(jnp.int32, cosine.shape, 0)
    is_tgt = labels == cls_iota
    cos_t = jnp.sum(jnp.where(is_tgt, cosine, 0.0), axis=0, keepdims=True)

    # softmax denominator over all K classes (the only remaining K*t work)
    denom = jnp.sum(jnp.exp(scale * cosine), axis=0, keepdims=True)   # (1, t)

    if use_margin:
        # ArcFace margin applied to the target class only (all (1,t) math)
        sine_t = jnp.sqrt(jnp.clip(1.0 - cos_t * cos_t, 0.0, 1.0))
        phi_t = cos_t * cos_m - sine_t * sin_m
        if easy_margin:
            phi_t = jnp.where(cos_t > 0.0, phi_t, cos_t)
        else:
            phi_t = jnp.where(cos_t > th, phi_t, cos_t - mm)
        positive = jnp.exp(scale * phi_t)
        # replace the target term of the denominator with the margined logit
        denom = denom - jnp.exp(scale * cos_t) + positive
    else:
        positive = jnp.exp(scale * cos_t)

    col_loss = jnp.log(positive / (denom + 1e-7) + 1e-7)               # (1, t)

    # lane-shaped accumulator: pure VALU adds per step, no per-step lane reduce
    acc_ref[...] += col_loss

    @pl.when(j == pl.num_programs(1) - 1)
    def _():
        out_ref[0] = jnp.sum(acc_ref[...], axis=1, keepdims=True)      # (1, 1)


def _vmem_budgets():
    """Generation-aware scoped-VMEM limit and per-step tile budget."""
    try:
        cap = int(getattr(pltpu.get_tpu_info(), "vmem_capacity_bytes"))
    except Exception:
        cap = 64 << 20                      # conservative default (v7x-sized)
    # leave headroom for compiler internals / spills
    vmem_limit = min((cap * 3) // 4, 96 << 20)    # v7x ~48 MiB, v5e/v6e 96 MiB
    tile_budget = (vmem_limit * 3) // 5
    return vmem_limit, tile_budget


def _pick_hw_tile(hw, c, k, x_itemsize, tile_budget_bytes):
    """Largest multiple-of-128 divisor of hw whose per-step VMEM footprint fits.

    Footprint ~= double-buffered features + labels + lane accumulator + a few
    live (K,t)/(1,t) f32 intermediates.
    """
    per_lane = (2 * c * x_itemsize      # feature double buffer
                + 2 * 4                 # label double buffer (int32)
                + 4                     # (1,t) f32 accumulator
                + 3 * k * 4             # live (K,t) f32 intermediates
                + 6 * 4)                # assorted (1,t) f32 temporaries
    best = None
    t = 128
    while t <= hw:
        if hw % t == 0 and per_lane * t <= tile_budget_bytes:
            best = t
        t += 128
    # TODO(synk): for H*W with no multiple-of-128 divisor (e.g. 56*56), a
    # non-divisor tile + lane mask on the last tile would be better than one
    # full-HW block; kept as the simple fallback here.
    return best if best is not None else hw


def prototype_loss(x, gt, weight, *, scale, margin, easy_margin=True, t_hw=None):
    """x: (B, C, H, W) float, gt: (B, 1, H, W) or (B, H, W) int labels, weight: (K, C)."""
    B, C, H, W = x.shape
    if gt.ndim == 3:
        gt = gt[:, None]
    if gt.shape[-2:] != (H, W):  # F.interpolate(..., mode='nearest') equivalent
        hg, wg = gt.shape[-2:]
        ridx = jnp.floor(jnp.arange(H) * (hg / H)).astype(jnp.int32)
        cidx = jnp.floor(jnp.arange(W) * (wg / W)).astype(jnp.int32)
        gt = gt[:, :, ridx[:, None], cidx[None, :]]

    HW = H * W
    N = B * HW
    K = weight.shape[0]

    vmem_limit, tile_budget = _vmem_budgets()
    if t_hw is None:
        t_hw = _pick_hw_tile(HW, C, K, jnp.dtype(x.dtype).itemsize, tile_budget)
    assert HW % t_hw == 0, "spatial tile must divide H*W"

    # native NCHW layout: metadata-only reshapes, feature stream keeps its dtype
    x3 = x.reshape(B, C, HW)
    gt3 = gt.reshape(B, 1, HW).astype(jnp.int32)

    # prototype normalization hoisted out of the per-tile body (K x C is tiny);
    # cast to the feature dtype so the MXU runs at native rate (bf16 in -> bf16 matmul)
    w32 = weight.astype(jnp.float32)
    wn = w32 / jnp.maximum(
        jnp.sqrt(jnp.sum(w32 * w32, axis=-1, keepdims=True)), 1e-12)
    wn = wn.astype(x.dtype)
    # NOTE: wn's block index never changes; single-buffering it would save
    # K*C*itemsize of VMEM but pipeline_mode=pl.Buffered(1) support is not
    # relied upon here for compile safety.

    kernel = functools.partial(
        _proto_loss_kernel,
        cos_m=math.cos(margin), sin_m=math.sin(margin),
        scale=float(scale), use_margin=(margin != 0), easy_margin=easy_margin,
        th=math.cos(math.pi - margin), mm=math.sin(math.pi - margin) * margin)

    partial_sums = pl.pallas_call(
        kernel,
        out_shape=jax.ShapeDtypeStruct((B, 1, 1), jnp.float32),
        grid_spec=pltpu.PrefetchScalarGridSpec(
            num_scalar_prefetch=0,
            grid=(B, HW // t_hw),
            in_specs=[
                pl.BlockSpec((1, 1, t_hw), lambda b, j: (b, 0, j)),   # labels (lane-dense)
                pl.BlockSpec((1, C, t_hw), lambda b, j: (b, 0, j)),   # features (native NCHW)
                pl.BlockSpec((K, C), lambda b, j: (0, 0)),            # prototypes (resident)
            ],
            out_specs=pl.BlockSpec((1, 1, 1), lambda b, j: (b, 0, 0)),
            scratch_shapes=[pltpu.VMEM((1, t_hw), jnp.float32)],      # lane-shaped accumulator
        ),
        compiler_params=pltpu.CompilerParams(
            dimension_semantics=("parallel", "arbitrary"),
            vmem_limit_bytes=vmem_limit),
    )(gt3, x3, wn)

    # single normalization at the end
    return -jnp.sum(partial_sums) / N


def _reference_loss(x, gt, weight, *, scale, margin, easy_margin=True):
    """Pure-JAX reference mirroring the PyTorch forward."""
    B, C, H, W = x.shape
    N = B * H * W
    fx = jnp.transpose(x, (0, 2, 3, 1)).reshape(N, C).astype(jnp.float32)
    fgt = jnp.transpose(gt, (0, 2, 3, 1)).reshape(N)
    K = weight.shape[0]
    onehot = jax.nn.one_hot(fgt, K, dtype=jnp.float32)
    wn = weight / jnp.maximum(jnp.linalg.norm(weight, axis=-1, keepdims=True), 1e-12)
    xn = fx / jnp.maximum(jnp.linalg.norm(fx, axis=-1, keepdims=True), 1e-12)
    cosine = xn @ wn.T
    sine = jnp.sqrt(jnp.clip(1.0 - cosine ** 2, 0.0, 1.0))
    phi = cosine * math.cos(margin) - sine * math.sin(margin)
    if easy_margin:
        phi = jnp.where(cosine > 0, phi, cosine)
    else:
        phi = jnp.where(cosine > math.cos(math.pi - margin), phi,
                        cosine - math.sin(math.pi - margin) * margin)
    if margin != 0:
        cosine = onehot * phi + (1.0 - onehot) * cosine
    if scale != 1:
        cosine = scale * cosine
    positive = jnp.exp(jnp.sum(cosine * onehot, axis=-1))
    sum_all = jnp.sum(jnp.exp(cosine), axis=-1)
    return -jnp.mean(jnp.log(positive / (sum_all + 1e-7) + 1e-7))


if __name__ == "__main__":
    # small, deterministic example shapes
    B, C, H, W = 2, 32, 16, 16
    num_classes = 8
    scale, margin = 30.0, 0.5

    key = jax.random.PRNGKey(0)
    kx, kg, kw = jax.random.split(key, 3)
    x = jax.random.normal(kx, (B, C, H, W), dtype=jnp.float32)
    gt = jax.random.randint(kg, (B, 1, H, W), 0, num_classes, dtype=jnp.int32)
    # nn.Embedding weight (num_classes, embedding_dim), init='normal' (deterministic here)
    # TODO(synk): 'kmeans' init / use_feature update the embedding weights from data at
    # train time; here the prototype table is provided as a fixed parameter.
    emb_weight = jax.random.normal(kw, (num_classes, C), dtype=jnp.float32)

    loss = prototype_loss(x, gt, emb_weight, scale=scale, margin=margin,
                          easy_margin=True)
    loss = jax.block_until_ready(loss)

    ref = _reference_loss(x, gt, emb_weight, scale=scale, margin=margin,
                          easy_margin=True)
    assert jnp.allclose(loss, ref, rtol=1e-4, atol=1e-4), (loss, ref)
    print("KERNEL_OK")
</pallas_src>

<mosaic_0001>
module attributes {stable_mosaic.version = 11 : i64} {
  func.func @_proto_loss_kernel(%arg0: i32, %arg1: i32, %arg2: memref<1x1x256xi32, #tpu.memory_space<vmem>>, %arg3: memref<1x32x256xf32, #tpu.memory_space<vmem>>, %arg4: memref<8x32xf32, #tpu.memory_space<vmem>>, %arg5: memref<1x1x1xf32, #tpu.memory_space<vmem>>, %arg6: memref<1x256xf32, #tpu.memory_space<vmem>>) attributes {dimension_semantics = [#tpu.dimension_semantics<parallel>, #tpu.dimension_semantics<arbitrary>], iteration_bounds = array<i64: 2, 1>, scalar_prefetch = 0 : i64, scratch_operands = 1 : i64, tpu.core_type = #tpu.core_type<tc>, window_params = [{transform_indices = @transform_0, window_bounds = array<i64: 1, 1, 256>}, {transform_indices = @transform_1, window_bounds = array<i64: 1, 32, 256>}, {pipeline_mode = #tpu.pipeline_mode<synchronous>, transform_indices = @transform_2, window_bounds = array<i64: 8, 32>}, {transform_indices = @transform_3, window_bounds = array<i64: 1, 1, 1>}]} {
    %c0_i32 = arith.constant 0 : i32
    %0 = arith.cmpi eq, %arg1, %c0_i32 : i32
    %1 = arith.extui %0 : i1 to i32
    %c0_i32_0 = arith.constant 0 : i32
    %2 = arith.cmpi ne, %1, %c0_i32_0 : i32
    scf.if %2 {
      %cst_30 = arith.constant 0.000000e+00 : f32
      %65 = vector.broadcast %cst_30 : f32 to vector<1x256xf32>
      %c0_31 = arith.constant 0 : index
      %c0_32 = arith.constant 0 : index
      %66 = vector.load %arg6[%c0_31, %c0_32] : memref<1x256xf32, #tpu.memory_space<vmem>>, vector<1x256xf32>
      tpu.vector_store %arg6[%c0_31, %c0_32], %65 {strides = array<i32>} : memref<1x256xf32, #tpu.memory_space<vmem>>, vector<1x256xf32>,
    } else {
    }
    %c0 = arith.constant 0 : index
    %c0_1 = arith.constant 0 : index
    %c0_2 = arith.constant 0 : index
    %3 = vector.load %arg3[%c0, %c0_1, %c0_2] : memref<1x32x256xf32, #tpu.memory_space<vmem>>, vector<1x32x256xf32>
    %4 = vector.shape_cast %3 : vector<1x32x256xf32> to vector<32x256xf32>
    %c0_3 = arith.constant 0 : index
    %c0_4 = arith.constant 0 : index
    %c0_5 = arith.constant 0 : index
    %5 = vector.load %arg2[%c0_3, %c0_4, %c0_5] : memref<1x1x256xi32, #tpu.memory_space<vmem>>, vector<1x1x256xi32>
    %6 = vector.shape_cast %5 : vector<1x1x256xi32> to vector<1x256xi32>
    %7 = arith.mulf %4, %4 : vector<32x256xf32>
    %cst = arith.constant dense<0.000000e+00> : vector<256xf32>
    %8 = vector.multi_reduction <add>, %7, %cst [0] : vector<32x256xf32> to vector<256xf32>
    %9 = vector.shape_cast %8 : vector<256xf32> to vector<1x256xf32>
    %cst_6 = arith.constant 1.000000e-24 : f32
    %10 = vector.broadcast %cst_6 : f32 to vector<1x256xf32>
    %11 = arith.maximumf %9, %10 : vector<1x256xf32>
    %12 = math.rsqrt %11 : vector<1x256xf32>
    %c0_7 = arith.constant 0 : index
    %c0_8 = arith.constant 0 : index
    %13 = vector.load %arg4[%c0_7, %c0_8] : memref<8x32xf32, #tpu.memory_space<vmem>>, vector<8x32xf32>
    %cst_9 = arith.constant dense<0.000000e+00> : vector<8x256xf32>
    %14 = tpu.matmul %13, %4, %cst_9 {dimension_numbers = #tpu.dot_dimension_numbers<[1], [0], [0], [1], [0, 0, 1, 1], [], []>} : vector<8x32xf32>, vector<32x256xf32>, vector<8x256xf32> -> vector<8x256xf32>
    %15 = vector.broadcast %12 : vector<1x256xf32> to vector<8x256xf32>
    %16 = arith.mulf %14, %15 : vector<8x256xf32>
    %17 = tpu.iota {dimensions = array<i32: 0>} : vector<8x256xi32>
    %18 = vector.broadcast %6 : vector<1x256xi32> to vector<8x256xi32>
    %19 = arith.cmpi eq, %18, %17 : vector<8x256xi32>
    %cst_10 = arith.constant 0.000000e+00 : f32
    %20 = vector.broadcast %cst_10 : f32 to vector<8x256xf32>
    %21 = arith.select %19, %16, %20 : vector<8x256xi1>, vector<8x256xf32>
    %cst_11 = arith.constant dense<0.000000e+00> : vector<256xf32>
    %22 = vector.multi_reduction <add>, %21, %cst_11 [0] : vector<8x256xf32> to vector<256xf32>
    %23 = vector.shape_cast %22 : vector<256xf32> to vector<1x256xf32>
    %cst_12 = arith.constant 3.000000e+01 : f32
    %24 = vector.broadcast %cst_12 : f32 to vector<8x256xf32>
    %25 = arith.mulf %24, %16 : vector<8x256xf32>
    %26 = math.exp %25 : vector<8x256xf32>
    %cst_13 = arith.constant dense<0.000000e+00> : vector<256xf32>
    %27 = vector.multi_reduction <add>, %26, %cst_13 [0] : vector<8x256xf32> to vector<256xf32>
    %28 = vector.shape_cast %27 : vector<256xf32> to vector<1x256xf32>
    %29 = arith.mulf %23, %23 : vector<1x256xf32>
    %cst_14 = arith.constant 1.000000e+00 : f32
    %30 = vector.broadcast %cst_14 : f32 to vector<1x256xf32>
    %31 = arith.subf %30, %29 : vector<1x256xf32>
    %cst_15 = arith.constant 0.000000e+00 : f32
    %cst_16 = arith.constant 1.000000e+00 : f32
    %32 = vector.broadcast %cst_15 : f32 to vector<1x256xf32>
    %33 = arith.maximumf %32, %31 : vector<1x256xf32>
    %34 = vector.broadcast %cst_16 : f32 to vector<1x256xf32>
    %35 = arith.minimumf %34, %33 : vector<1x256xf32>
    %36 = math.sqrt %35 : vector<1x256xf32>
    %cst_17 = arith.constant 0.87758255 : f32
    %37 = vector.broadcast %cst_17 : f32 to vector<1x256xf32>
    %38 = arith.mulf %23, %37 : vector<1x256xf32>
    %cst_18 = arith.constant 0.47942555 : f32
    %39 = vector.broadcast %cst_18 : f32 to vector<1x256xf32>
    %40 = arith.mulf %36, %39 : vector<1x256xf32>
    %41 = arith.subf %38, %40 : vector<1x256xf32>
    %cst_19 = arith.constant 0.000000e+00 : f32
    %42 = vector.broadcast %cst_19 : f32 to vector<1x256xf32>
    %43 = arith.cmpf ogt, %23, %42 : vector<1x256xf32>
    %44 = arith.select %43, %41, %23 : vector<1x256xi1>, vector<1x256xf32>
    %cst_20 = arith.constant 3.000000e+01 : f32
    %45 = vector.broadcast %cst_20 : f32 to vector<1x256xf32>
    %46 = arith.mulf %45, %44 : vector<1x256xf32>
    %47 = math.exp %46 : vector<1x256xf32>
    %cst_21 = arith.constant 3.000000e+01 : f32
    %48 = vector.broadcast %cst_21 : f32 to vector<1x256xf32>
    %49 = arith.mulf %48, %23 : vector<1x256xf32>
    %50 = math.exp %49 : vector<1x256xf32>
    %51 = arith.subf %28, %50 : vector<1x256xf32>
    %52 = arith.addf %51, %47 : vector<1x256xf32>
    %cst_22 = arith.constant 1.000000e-07 : f32
    %53 = vector.broadcast %cst_22 : f32 to vector<1x256xf32>
    %54 = arith.addf %52, %53 : vector<1x256xf32>
    %55 = arith.divf %47, %54 : vector<1x256xf32>
    %cst_23 = arith.constant 1.000000e-07 : f32
    %56 = vector.broadcast %cst_23 : f32 to vector<1x256xf32>
    %57 = arith.addf %55, %56 : vector<1x256xf32>
    %58 = math.log %57 : vector<1x256xf32>
    %c0_24 = arith.constant 0 : index
    %c0_25 = arith.constant 0 : index
    %59 = vector.load %arg6[%c0_24, %c0_25] : memref<1x256xf32, #tpu.memory_space<vmem>>, vector<1x256xf32>
    %60 = arith.addf %59, %58 : vector<1x256xf32>
    %c0_26 = arith.constant 0 : index
    %c0_27 = arith.constant 0 : index
    %61 = vector.load %arg6[%c0_26, %c0_27] : memref<1x256xf32, #tpu.memory_space<vmem>>, vector<1x256xf32>
    tpu.vector_store %arg6[%c0_26, %c0_27], %60 {strides = array<i32>} : memref<1x256xf32, #tpu.memory_space<vmem>>, vector<1x256xf32>,
    %c0_i32_28 = arith.constant 0 : i32
    %62 = arith.cmpi eq, %arg1, %c0_i32_28 : i32
    %63 = arith.extui %62 : i1 to i32
    %c0_i32_29 = arith.constant 0 : i32
    %64 = arith.cmpi ne, %63, %c0_i32_29 : i32
    scf.if %64 {
      %c0_30 = arith.constant 0 : index
      %c0_31 = arith.constant 0 : index
      %65 = vector.load %arg6[%c0_30, %c0_31] : memref<1x256xf32, #tpu.memory_space<vmem>>, vector<1x256xf32>
      %cst_32 = arith.constant dense<0.000000e+00> : vector<1xf32>
      %66 = vector.multi_reduction <add>, %65, %cst_32 [1] : vector<1x256xf32> to vector<1xf32>
      %67 = vector.shape_cast %66 : vector<1xf32> to vector<1x1xf32>
      %c0_33 = arith.constant 0 : index
      %c0_34 = arith.constant 0 : index
      %c0_35 = arith.constant 0 : index
      %68 = vector.load %arg5[%c0_33, %c0_34, %c0_35] : memref<1x1x1xf32, #tpu.memory_space<vmem>>, vector<1x1x1xf32>
      %69 = vector.shape_cast %68 : vector<1x1x1xf32> to vector<1x1xf32>
      %70 = vector.shape_cast %67 : vector<1x1xf32> to vector<1x1x1xf32>
      tpu.vector_store %arg5[%c0_33, %c0_34, %c0_35], %70 {strides = array<i32>} : memref<1x1x1xf32, #tpu.memory_space<vmem>>, vector<1x1x1xf32>,
    } else {
    }
    return
  }
  func.func @transform_0(%arg0: i32, %arg1: i32) -> (i32, i32, i32) {
    %c0_i32 = arith.constant 0 : i32
    %c0_i32_0 = arith.constant 0 : i32
    return %arg0, %c0_i32, %arg1 : i32, i32, i32
  }
  func.func @transform_1(%arg0: i32, %arg1: i32) -> (i32, i32, i32) {
    %c0_i32 = arith.constant 0 : i32
    %c0_i32_0 = arith.constant 0 : i32
    return %arg0, %c0_i32, %arg1 : i32, i32, i32
  }
  func.func @transform_2(%arg0: i32, %arg1: i32) -> (i32, i32) {
    %c0_i32 = arith.constant 0 : i32
    %c0_i32_0 = arith.constant 0 : i32
    %c0_i32_1 = arith.constant 0 : i32
    return %c0_i32, %c0_i32_0 : i32, i32
  }
  func.func @transform_3(%arg0: i32, %arg1: i32) -> (i32, i32, i32) {
    %c0_i32 = arith.constant 0 : i32
    %c0_i32_0 = arith.constant 0 : i32
    %c0_i32_1 = arith.constant 0 : i32
    return %arg0, %c0_i32, %c0_i32_0 : i32, i32, i32
  }
}

</mosaic_0001>

<bundles_post_ra>
// kernel: tpu_custom_call.1
= control target key start
LH: loop header
LB: loop body
LE: loop exit
PB: predicated region body
PF: predicated region fallthrough
CT: control target
= control target key end

     0   :  { %8 = vsyncpa [#allocation4], 0  ;;  %s1126_s0 = inlined_call_operand.hbm [shape: s32[2,1,256], index: 0, kind: input, shape index: {}]   ;;  %s1127_s1 = inlined_call_operand.hbm [shape: f32[2,32,256], index: 1, kind: input, shape index: {}]   ;;  %s1128_s2 = inlined_call_operand.hbm [shape: f32[8,32], index: 2, kind: input, shape index: {}]   ;;  %s1129_s3 = inlined_call_operand.vmem [shape: f32[2,1,1], index: 3, kind: output, shape index: {}]  }
   0x1   :  { %10 = vsyncpa [#allocation4 + $0x1], 0 }
   0x2   :  { %11 = vsyncpa [#allocation6], 0 }
   0x3   :  { %13 = vsyncpa [#allocation6 + $0x1], 0  ;;  %s934_s12 = smov 0   ;;  %s936_s13 = smov 0  }
   0x4   :  { %s938_s14 = smov 0   ;;  %s940_s15 = smov 0  }
   0x5   :  { %s942_s16 = smov 0   ;;  %s944_s17 = smov 0  }
   0x6 LB: > { %s642_s18 = sadd.s32 4294967295, %s905_s17   ;;  %s40_s19 = sadd.s32 1, %s893_s14  ;;  %s905_s17 = sphi %s944_s17, %s19_s17   ;;  %s901_s16 = sphi %s942_s16, %s1151_s16   ;;  %s897_s15 = sphi %s940_s15, %s1150_s15   ;;  %s893_s14 = sphi %s938_s14, %s1149_s14   ;;  %s889_s13 = sphi %s936_s13, %s1148_s13   ;;  %s885_s12 = sphi %s934_s12, %s1147_s12  }
   0x7   : > { %p47_p0 = scmp.ne.s32.totalorder %s893_s14, %s889_s13  ;;  %p53_p1 = scmp.ne.s32.totalorder %s889_s13, %s885_s12 }
   0x8   : > { %p969_p2 = scmp.eq.s32.totalorder %s642_s18, 0  ;;  %p644_p3 = scmp.ge.s32.totalorder %s905_s17, 1 }
   0x9   : > { %p139_p4 = scmp.lt.s32.totalorder %s905_s17, 3  ;;  %s907_s23 = smov [#allocation7]  }
   0xa   : > { %s1134_s20 = scalar_select %p969_p2, 1, 0 }
   0xb   : > { %p977_p5 = por %p969_p2, %p53_p1  ;;  %p981_p6 = pnand %p644_p3, %p139_p4 }
   0xc   : > { %s152_s24 = sshll.u32 %s907_s23, 4  ;;  %p48_p8 = scmp.eq.s32.totalorder %s905_s17, 0  ;;  %s153_s24 = int_to_ptr.vmem [resolvable:$true] %s152_s24 }
   0xd   : > { %s1135_s21 = scalar_select %p977_p5, 1, 0 }
   0xe   : > { %s1136_s22 = scalar_select %p981_p6, 1, 0 }
   0xf   : > { %p670_p7 = pneg %p981_p6  ;;  %s31_s26 = sadd.s32 1, %s901_s16 }
  0x10   : > { %p995_p10 = scmp.ge.s32.totalorder %s31_s26, 2  ;;  %p1002_p11 = por %p48_p8, %p47_p0 }
  0x11   : > { %p990_p9 = pnand %p670_p7, %p969_p2  ;;  %p682_p12 = scmp.lt.s32.totalorder %s905_s17, 2 }
  0x12   : > { %s776_s29 = scalar_lea.vmem %s153_s24, 128  ;;  %p784_p7 = scmp.lt.s32.totalorder %s153_s24, %s153_s24 }
  0x13   : > { %p767_p13 = pneg %p990_p9  ;;  %p777_p1 = scmp.ne.s32.totalorder %s153_s24, %s776_s29 }
  0x14   : > { %p785_p2 = scmp.lt.s32.totalorder %s776_s29, %s776_s29 }
  0x15   : > { %p779_p3 = pnand %p777_p1, %p767_p13 }
  0x16   : > { %p786_p5 = por %p785_p2, %p784_p7 }
  0x17   : > { %p780_p4 = pneg %p779_p3 }
  0x19   : > { %p787_p6 = pnand %p786_p5, %p780_p4 }
  0x1b   : > { %790 = shalt.err (!%p787_p6)
}
  0x1c   : > { %673 = dma.hbm_to_vmem [thread:$0]  (!%p990_p9), %s1128_s2, 128, %s153_s24, [#allocation6]  }
  0x1d   : > { %s1153_s26 = smov (%p995_p10, %s31_s26), 0  ;;  %s1019_s5 = sand.u32 1, %s893_s14  }
  0x1e   : > { %s660_s6 = sshll.u32 %s901_s16, 5  ;;  %s35_s7 = ssub.s32 %s901_s16, %s1153_s26 }
  0x1f   : > { %p38_p0 = scmp.eq.s32.totalorder %s35_s7, 0  ;;  %s647_s8 = sshll.u32 %s1019_s5, 1 }
  0x20   : > { %s175_s11 = scalar_lea.hbm %s1126_s0, %s660_s6  ;;  %s167_s23 = scalar_lea.vmem [#allocation3], %s647_s8 }
  0x21   : > { %s1031_s12 = scalar_select %p38_p0, %s893_s14, %s40_s19  }
  0x22   : > { %s177_s24 = sshll.u32 %s167_s23, 4  ;;  %p1037_p2 = pnand %p682_p12, %p1002_p11  ;;  %s178_s24 = int_to_ptr.vmem [resolvable:$true] %s177_s24 }
  0x23   : > { %s650_s27 = sshll.u32 %s1019_s5, 6  ;;  %s164_s29 = scalar_lea.sflag [#allocation4], %s1019_s5 }
  0x24   : > { %p793_p5 = pneg %p1037_p2  ;;  %s804_s30 = scalar_lea.vmem %s178_s24, 32 }
  0x25   : > { %p805_p6 = scmp.ne.s32.totalorder %s178_s24, %s804_s30  ;;  %s908_s19 = smov [#allocation3]  }
  0x26   : > { %s809_s28 = sshll.u32 %s908_s19, 4  ;;  %s810_s28 = int_to_ptr.vmem [resolvable:$false] %s809_s28 }
  0x27   : > { %p807_p8 = pnand %p805_p6, %p793_p5  ;;  %s811_s4 = scalar_lea.vmem %s810_s28, 64 }
  0x28   : > { %p812_p10 = scmp.lt.s32.totalorder %s178_s24, %s810_s28  ;;  %p813_p11 = scmp.lt.s32.totalorder %s811_s4, %s804_s30 }
  0x29   : > { %p808_p9 = pneg %p807_p8 }
  0x2a   : > { %p814_p12 = por %p813_p11, %p812_p10 }
  0x2c   : > { %p815_p13 = pnand %p814_p12, %p808_p9 }
  0x2e   : > { %818 = shalt.err (!%p815_p13)
}
  0x2f   : > { %677 = dma.hbm_to_vmem [thread:$0]  (!%p1037_p2), %s175_s11, 32, %s178_s24, %s164_s29  }
  0x30   : > { %s661_s5 = sshll.u32 %s901_s16, 10  ;;  %s188_s6 = scalar_lea.vmem [#allocation5], %s650_s27 }
  0x31   : > { %s197_s7 = sshll.u32 %s188_s6, 4  ;;  %s184_s8 = sand.u32 1, %s905_s17   ;;  %s198_s7 = int_to_ptr.vmem [resolvable:$true] %s197_s7 }
  0x32   : > { %s196_s23 = scalar_lea.hbm %s1127_s1, %s661_s5  ;;  %s185_s19 = scalar_lea.sflag [#allocation6], %s184_s8 }
  0x33   : > { %s832_s30 = scalar_lea.vmem %s198_s7, 1024  ;;  %s909_s28 = smov [#allocation5]  }
  0x34   : > { %p833_p1 = scmp.ne.s32.totalorder %s198_s7, %s832_s30  ;;  %s837_s4 = sshll.u32 %s909_s28, 4  ;;  %s838_s4 = int_to_ptr.vmem [resolvable:$false] %s837_s4 }
  0x35   : > { %s839_s11 = scalar_lea.vmem %s838_s4, 2048  ;;  %p840_p7 = scmp.lt.s32.totalorder %s198_s7, %s838_s4 }
  0x36   : > { %p835_p3 = pnand %p833_p1, %p793_p5  ;;  %p841_p0 = scmp.lt.s32.totalorder %s839_s11, %s832_s30 }
  0x38   : > { %p836_p4 = pneg %p835_p3  ;;  %p842_p6 = por %p841_p0, %p840_p7 }
  0x3a   : > { %p843_p8 = pnand %p842_p6, %p836_p4 }
  0x3c   : > { %846 = shalt.err (!%p843_p8)
}
  0x3d   : > { %s910_s24 = smov 256   ;;  %s911_s27 = smov 16  }
  0x3e   : > { %680 = dma.hbm_to_vmem [thread:$0]  (!%p1037_p2), %s196_s23, 1024, %s198_s7, %s185_s19, %s910_s24, %s910_s24, %s911_s27  }
  0x3f   : > { %p1141_p9 = scmp.ne.s32.totalorder %s1136_s22, 0 }
  0x40   : > { %s211_s29 = sand.u32 (!%p1141_p9), 1, %s889_s13   ;;  %p1142_p5 = scmp.ne.s32.totalorder (!%p1141_p9), %s1135_s21, 0 }
  0x41   : > { %209 = sbr.rel (%p1141_p9) target bundleno = 543 (0x21f), region = 32  ;;  %s654_s5 = sshll.u32 (!%p1141_p9), %s211_s29, 1 }
  0x42   : > { %s212_s6 = scalar_lea.sflag (!%p1141_p9), [#allocation4], %s211_s29  ;;  %s1063_s8 = scalar_lea.vmem (!%p1141_p9), [#allocation3], %s654_s5 }
  0x46   : > { %872 = dma.done.wait (%p1142_p5), %s212_s6, 32  }
  0x47   : > { %874 = vsyncadd (%p1142_p5), %s212_s6, 4294967264  ;;  %s220_s25 = sand.u32 1, %s642_s18   ;;  %s655_s7 = sshll.u32 %s211_s29, 6 }
  0x48   : > { %s221_s9 = scalar_lea.sflag [#allocation6], %s220_s25  ;;  %s224_s22 = scalar_lea.vmem [#allocation5], %s655_s7 }
  0x49   : > { %876 = dma.done.wait (%p1142_p5), %s221_s9, 1024  }
  0x4a   : > { %878 = vsyncadd (%p1142_p5), %s221_s9, 4294966272  ;;  %p1143_p2 = scmp.ne.s32.totalorder %s1134_s20, 0 }
  0x4c   : > { %880 = dma.done.wait (%p1143_p2), [#allocation6], 128  }
  0x4d   : > { %882 = vsyncadd (%p1143_p2), [#allocation6], 4294967168  ;;  %v263_v0 = vlaneseq  ;;  %v912_v1 = vmov 0.0   ;;  %v275_v3 = vld [vmem:[%s224_s22 + $0x38] sm:$0xff]  ;;  %v274_v4 = vld [vmem:[%s224_s22 + $0x30] sm:$0xff]  ;;  %vm308_vm1 = vcmask 261120  }
  0x4e   : > { %376 = vmatprep.mubr.f32.mxu0 %v912_v1  ;;  %v273_v5 = vld [vmem:[%s224_s22 + $0x28] sm:$0xff]  ;;  %336 = vmatprep.subr.mxu0 %v275_v3  ;;  %v272_v6 = vld [vmem:[%s224_s22 + $0x20] sm:$0xff]  ;;  %v271_v7 = vld [vmem:[%s224_s22 + $0x18] sm:$0xff]  ;;  %v284_v17 = vmul.f32 %v275_v3, %v275_v3  ;;  %v283_v18 = vmul.f32 %v274_v4, %v274_v4  ;;  %vm529_vm10 = vcmask 1040384   ;;  %p256_p10 = scmp.lt.s32.totalorder %s897_s15, 1  ;;  %vm535_vm11 = vcmask 0  }
  0x4f   : > { %vm1079_vm0 = vcmp.lt.s32.totalorder %v263_v0, 256  ;;  %v270_v8 = vld [vmem:[%s224_s22 + $0x10] sm:$0xff]  ;;  %337 = vmatpush1.msra.mxu0 %v274_v4  ;;  %v280_v9 = vmul.f32 %v271_v7, %v271_v7  ;;  %v269_v11 = vld [vmem:[%s224_s22 + $0x8] sm:$0xff]  ;;  %v268_v12 = vld [vmem:[%s224_s22] sm:$0xff]  ;;  %v282_v13 = vmul.f32 %v273_v5, %v273_v5  ;;  %v281_v14 = vmul.f32 %v272_v6, %v272_v6 }
  0x50   : > { %267 = vst.msk [vmem:[#allocation2] sm:$0x3] %vm1079_vm0, %v912_v1  ;;  %v279_v10 = vmul.f32 %v270_v8, %v270_v8  ;;  %338 = vmatprep.subr.mxu0 %v273_v5  ;;  %v278_v15 = vmul.f32 %v269_v11, %v269_v11  ;;  %v277_v16 = vmul.f32 %v268_v12, %v268_v12  ;;  %v307_v21 = vld [vmem:[#allocation7] sm:$0xff]  ;;  %v1085_v40 = vshrl.u32 %v263_v0, 7  ;;  %v276_v42 = vld [vmem:[%s1063_s8] sm:$0x3] }
  0x51   : > { %339 = vmatpush1.msra.mxu0 %v272_v6  ;;  %s1155_s15 = smov (!%p256_p10, %s897_s15), 1 }
  0x52   : > { %340 = vmatprep.subr.mxu0 %v271_v7  ;;  %v294_v19 = vadd.f32 %v280_v9, %v278_v15  ;;  %v285_v20 = vadd.f32 %v279_v10, %v277_v16  ;;  %v389_v41 = vsub.s32 0, %v1085_v40  ;;  %v393_v43 = vsub.s32 1, %v1085_v40  ;;  %s258_s21 = scalar_lea.vmem %s1129_s3, %s1155_s15 }
  0x53   : > { %341 = vmatpush1.msra.mxu0 %v270_v8 }
  0x54   : > { %v295_v22 = vadd.f32 %v294_v19, %v282_v13  ;;  %342 = vmatprep.subr.mxu0 %v269_v11  ;;  %v286_v23 = vadd.f32 %v285_v20, %v281_v14  ;;  %v390_v44 = vrot.slane %v276_v42, %v389_v41  ;;  %v394_v46 = vrot.slane %v276_v42, %v393_v43 }
  0x55   : > { %343 = vmatpush1.msra.mxu0 %v268_v12 }
  0x56   : > { %v296_v24 = vadd.f32 %v295_v22, %v284_v17  ;;  %v287_v25 = vadd.f32 %v286_v23, %v283_v18  ;;  %657 = vmatmul.mubr.msk.f32.vlgmr.msra.gmra.mxu0 %vm308_vm1, %v307_v21  ;;  %vm395_vm2 = vcmp.eq.s32.totalorder %v390_v44, %v1085_v40  ;;  %vm396_vm3 = vcmp.eq.s32.totalorder %v394_v46, %v1085_v40 }
  0x58   : > { %v288_v26 = vrot.slane %v287_v25, 4  ;;  %v297_v27 = vrot.slane %v296_v24, 4 }
  0x5a   : > { %v289_v28 = vadd.f32 %v288_v26, %v287_v25  ;;  %v298_v29 = vadd.f32 %v297_v27, %v296_v24 }
  0x5c   : > { %v290_v30 = vrot.slane %v289_v28, 2  ;;  %v299_v31 = vrot.slane %v298_v29, 2 }
  0x5e   : > { %v291_v32 = vadd.f32 %v290_v30, %v289_v28  ;;  %v300_v33 = vadd.f32 %v299_v31, %v298_v29 }
  0x60   : > { %v292_v34 = vrot.slane %v291_v32, 1  ;;  %v301_v35 = vrot.slane %v300_v33, 1 }
  0x62   : > { %v293_v36 = vadd.f32 %v292_v34, %v291_v32  ;;  %v302_v37 = vadd.f32 %v301_v35, %v300_v33 }
  0x64   : > { %v303_v38 = vmax.f32 %v293_v36, 1e-24  ;;  %v304_v39 = vmax.f32 %v302_v37, 1e-24 }
  0x66   : > { %737 = vrsqrt.f32 %v303_v38 }
  0x67   : > { %739 = vrsqrt.f32 %v304_v39 }
  0x73   : > { %v738_v45 = vpop.eup %737 }
  0x74   : > { %v740_v47 = vpop.eup %739 }
 0x116   : > { %v378_v48 = vpop.f32.mrf.mxu0 }
 0x117   : > { %v383_v49 = vmul.f32 %v738_v45, %v378_v48 }
 0x118   : > { %v380_v50 = vpop.f32.mrf.mxu0 }
 0x119   : > { %v397_v51 = vsel %vm395_vm2, %v383_v49, 0.0  ;;  %v384_v52 = vmul.f32 %v740_v47, %v380_v50  ;;  %v411_v1 = vmul.f32 30.0, %v383_v49 }
 0x11a   : > { %v399_v53 = vrot.slane %v397_v51, 4 }
 0x11b   : > { %v398_v54 = vsel %vm396_vm3, %v384_v52, 0.0  ;;  %v412_v6 = vmul.f32 30.0, %v384_v52  ;;  %v413_v7 = vmul.f32 1.442695, %v411_v1 }
 0x11c   : > { %v400_v55 = vadd.f32 %v399_v53, %v397_v51  ;;  %v405_v56 = vrot.slane %v398_v54, 4 }
 0x11d   : > { %v415_v12 = vmul.f32 1.442695, %v412_v6  ;;  %741 = vpow2.f32 %v413_v7 }
 0x11e   : > { %v401_v57 = vrot.slane %v400_v55, 2  ;;  %v406_v58 = vadd.f32 %v405_v56, %v398_v54 }
 0x120   : > { %v402_v59 = vadd.f32 %v401_v57, %v400_v55  ;;  %v407_v60 = vrot.slane %v406_v58, 2 }
 0x122   : > { %v403_v61 = vrot.slane %v402_v59, 1  ;;  %v408_v62 = vadd.f32 %v407_v60, %v406_v58 }
 0x124   : > { %v404_v63 = vadd.f32 %v403_v61, %v402_v59  ;;  %v409_v0 = vrot.slane %v408_v62, 1 }
 0x126   : > { %v429_v3 = vmul.f32 %v404_v63, %v404_v63  ;;  %v410_v4 = vadd.f32 %v409_v0, %v408_v62  ;;  %v467_v21 = vmul.f32 30.0, %v404_v63  ;;  %v451_v25 = vmul.f32 0.87758255, %v404_v63 }
 0x127   : > { %vm457_vm8 = vcmp.gt.f32.partialorder %v404_v63, 0.0 }
 0x128   : > { %v431_v5 = vsub.f32 1.0, %v429_v3  ;;  %v430_v8 = vmul.f32 %v410_v4, %v410_v4  ;;  %v468_v27 = vmul.f32 30.0, %v410_v4  ;;  %v469_v32 = vmul.f32 1.442695, %v467_v21  ;;  %v489_v21 = vld [vmem:[#allocation2] sm:$0x3] }
 0x129   : > { %v452_v36 = vmul.f32 0.87758255, %v410_v4  ;;  %vm458_vm9 = vcmp.gt.f32.partialorder %v410_v4, 0.0 }
 0x12a   : > { %v433_v9 = vmax.f32 %v431_v5, 0.0  ;;  %v432_v10 = vsub.f32 1.0, %v430_v8  ;;  %v742_v15 = vpop.eup %741  ;;  %v471_v42 = vmul.f32 1.442695, %v468_v27 }
 0x12b   : > { %v417_v19 = vrot.slane %v742_v15, 4 }
 0x12c   : > { %v435_v11 = vmin.f32 %v433_v9, 1.0  ;;  %v434_v13 = vmax.f32 %v432_v10, 0.0 }
 0x12d   : > { %v418_v31 = vadd.f32 %v742_v15, %v417_v19 }
 0x12e   : > { %743 = vrsqrt.f32 %v435_v11  ;;  %v436_v14 = vmin.f32 %v434_v13, 1.0  ;;  %vm439_vm4 = vcmp.eq.f32.partialorder %v435_v11, inf  ;;  %v442_v20 = vand.u32 2147483648, %v435_v11 }
 0x12f   : > { %745 = vpow2.f32 %v415_v12  ;;  %vm441_vm5 = vcmp.eq.f32.partialorder %v435_v11, 0.0  ;;  %v419_v44 = vrot.slane %v418_v31, 2 }
 0x130   : > { %747 = vrsqrt.f32 %v436_v14  ;;  %vm446_vm6 = vcmp.eq.f32.partialorder %v436_v14, inf  ;;  %v449_v30 = vand.u32 2147483648, %v436_v14  ;;  %vm448_vm7 = vcmp.eq.f32.partialorder %v436_v14, 0.0 }
 0x131   : > { %749 = vpow2.f32 %v469_v32  ;;  %v420_v51 = vadd.f32 %v419_v44, %v418_v31 }
 0x132   : > { %751 = vpow2.f32 %v471_v42 }
 0x133   : > { %v421_v54 = vrot.slane %v420_v51, 1 }
 0x135   : > { %v422_v56 = vadd.f32 %v421_v54, %v420_v51 }
 0x13b   : > { %v744_v16 = vpop.eup %743 }
 0x13c   : > { %v438_v17 = vmul.f32 %v744_v16, %v435_v11  ;;  %v746_v18 = vpop.eup %745 }
 0x13d   : > { %v748_v22 = vpop.eup %747  ;;  %v423_v29 = vrot.slane %v746_v18, 4 }
 0x13e   : > { %v440_v23 = vsel %vm439_vm4, %v435_v11, %v438_v17  ;;  %v445_v26 = vmul.f32 %v748_v22, %v436_v14  ;;  %v750_v57 = vpop.eup %749  ;;  %v913_v11 = vmov 1966171168  }
 0x13f   : > { %v443_v24 = vsel %vm441_vm5, %v442_v20, %v440_v23  ;;  %v424_v39 = vadd.f32 %v746_v18, %v423_v29  ;;  %v752_v59 = vpop.eup %751  ;;  %v473_v60 = vsub.f32 %v422_v56, %v750_v57  ;;  %v494_v12 = vunpack.c.l.s4 %v913_v11 }
 0x140   : > { %v453_v28 = vmul.f32 0.47942555, %v443_v24  ;;  %v447_v33 = vsel %vm446_vm6, %v436_v14, %v445_v26 }
 0x141   : > { %v450_v35 = vsel %vm448_vm7, %v449_v30, %v447_v33  ;;  %v425_v49 = vrot.slane %v424_v39, 2  ;;  %v495_v13 = vunpack.c.0.s8 %v494_v12 }
 0x142   : > { %v455_v34 = vsub.f32 %v451_v25, %v453_v28  ;;  %v454_v37 = vmul.f32 0.47942555, %v450_v35 }
 0x143   : > { %v426_v53 = vadd.f32 %v425_v49, %v424_v39  ;;  %v498_v16 = vsub.s32 %v495_v13, %v1085_v40 }
 0x144   : > { %v459_v38 = vsel %vm457_vm8, %v455_v34, %v404_v63  ;;  %v456_v46 = vsub.f32 %v452_v36, %v454_v37 }
 0x145   : > { %v461_v45 = vmul.f32 30.0, %v459_v38  ;;  %v427_v55 = vrot.slane %v426_v53, 1 }
 0x146   : > { %v460_v48 = vsel %vm458_vm9, %v456_v46, %v410_v4 }
 0x147   : > { %v463_v47 = vmul.f32 1.442695, %v461_v45  ;;  %v462_v50 = vmul.f32 30.0, %v460_v48  ;;  %v428_v58 = vadd.f32 %v427_v55, %v426_v53 }
 0x149   : > { %753 = vpow2.f32 %v463_v47  ;;  %v465_v52 = vmul.f32 1.442695, %v462_v50  ;;  %v474_v63 = vsub.f32 %v428_v58, %v752_v59 }
 0x14b   : > { %755 = vpow2.f32 %v465_v52 }
 0x156   : > { %v754_v61 = vpop.eup %753 }
 0x157   : > { %v475_v62 = vadd.f32 %v754_v61, %v473_v60 }
 0x158   : > { %v756_v0 = vpop.eup %755 }
 0x159   : > { %v477_v1 = vadd.f32 1e-07, %v475_v62  ;;  %v476_v3 = vadd.f32 %v756_v0, %v474_v63 }
 0x15b   : > { %757 = vrcp.f32 %v477_v1  ;;  %v478_v4 = vadd.f32 1e-07, %v476_v3 }
 0x15d   : > { %759 = vrcp.f32 %v478_v4 }
 0x168   : > { %v758_v5 = vpop.eup %757 }
 0x169   : > { %v480_v6 = vmul.f32 %v758_v5, %v754_v61 }
 0x16a   : > { %v760_v7 = vpop.eup %759 }
 0x16b   : > { %v483_v8 = vadd.f32 1e-07, %v480_v6  ;;  %v482_v9 = vmul.f32 %v760_v7, %v756_v0 }
 0x16d   : > { %761 = vlog2.f32 %v483_v8  ;;  %v484_v10 = vadd.f32 1e-07, %v482_v9 }
 0x16f   : > { %763 = vlog2.f32 %v484_v10 }
 0x17a   : > { %v762_v14 = vpop.eup %761 }
 0x17b   : > { %v486_v17 = vmul.f32 0.6931472, %v762_v14 }
 0x17c   : > { %v764_v15 = vpop.eup %763 }
 0x17d   : > { %v488_v18 = vmul.f32 0.6931472, %v764_v15 }
 0x17f   : > { %v492_v19 = vcombine.low %v486_v17, %v488_v18 }
 0x181   : > { %v499_v20 = vrot.slane %v492_v19, %v498_v16 }
 0x183   : > { %v506_v22 = vrot.slane %v499_v20, %v498_v16 }
 0x185   : > { %v508_v23 = vadd.f32 %v506_v22, %v489_v21 }
 0x187   : > { %513 = vst.msk [vmem:[#allocation2] sm:$0x3] %vm1079_vm0, %v508_v23 }
 0x18e   : > { %v517_v24 = vld [vmem:[#allocation2] sm:$0x3] }
 0x18f   : > { %v522_v25 = vrot.slane %v517_v24, %v389_v41  ;;  %v526_v26 = vrot.slane %v517_v24, %v393_v43 }
 0x191   : > { %v530_v27 = vsel %vm529_vm10, %v522_v25, 0.0  ;;  %v531_v28 = vsel %vm529_vm10, %v526_v26, 0.0 }
 0x192   : > { %v532_v29 = vadd.f32 %v531_v28, %v530_v27 }
 0x194   : > { %533 = vadd.xlane.f32.xlu0 %v532_v29 }
 0x21d   : > { %v534_v2 = vpop.xlane.xlu0 %533 }
 0x21e   : > { %536 = vst.msk [vmem:[%s258_s21] sm:$0x1] %vm535_vm11, %v534_v2 }
 0x21f PF: > { %s19_s17 = sadd.s32 1, %s905_s17   ;;  %s1146_s10 = smov %s1031_s12 }
 0x220   : > { %p16_p11 = scmp.ge.s32.totalorder %s19_s17, 4   ;;  %s1147_s12 = smov %s889_s13 }
 0x221   : > { %s1148_s13 = smov %s893_s14  ;;  %s1149_s14 = smov %s1146_s10 }
 0x222   : > { %s1150_s15 = smov %s901_s16  ;;  %s1151_s16 = smov %s1153_s26 }
 0x223   :  { %18 = sbr.rel (!%p16_p11) target bundleno = 6 (0x6), region = 97 }
 0x228   :  { %554 = vsyncpa [#allocation4], 1 }
 0x229   :  { %556 = vsyncpa [#allocation4 + $0x1], 1 }
 0x22a   :  { %557 = vsyncpa [#allocation6], 1 }
 0x22b   :  { %559 = vsyncpa [#allocation6 + $0x1], 1 }

</bundles_post_ra>
